<compile_context>
chip_gen: v7x
topology: tpu7x:2x2x1
jax: 0.10.0
libtpu: 0.0.40
codegen_flags: <defaults>
</compile_context>

<pallas_src>
import functools

import jax
import jax.numpy as jnp
from jax.experimental import pallas as pl
from jax.experimental.pallas import tpu as pltpu


def _flow_head_kernel(x_ref, w1_ref, b1_ref, w2_ref, b2_ref, mask_ref, o_ref,
                      *, W, n_pix, compute_dtype):
    # x_ref   : (1, c_in, n_pix)  f32, NCHW-flat input for one batch element
    # w1_ref  : (c_hid, 9*c_in)   compute_dtype, tap-major folded conv1 weights
    # b1_ref  : (c_hid, 1)        f32
    # w2_ref  : (2, 9*c_hid)      compute_dtype, tap-major folded conv2 weights
    # b2_ref  : (2, 1)            f32
    # mask_ref: (9, 1, n_pix)     f32 0/1 validity masks (padding=1 boundaries)
    # o_ref   : (1, 2, n_pix)     f32, NCHW-flat output (lane-dense store)
    x = x_ref[0]                                   # (c_in, n_pix)

    def conv3x3_patches(v):
        """v: (C, n_pix) f32 -> (9*C, n_pix) im2col patches in compute_dtype."""
        parts = []
        for dy in range(3):
            for dx in range(3):
                t = dy * 3 + dx
                off = (dy - 1) * W + (dx - 1)      # flat-index shift for this tap
                if off == 0:
                    shifted = v                    # centre tap: mask is all-ones
                else:
                    # pltpu.roll -> XLU lane rotation; mask kills wrap-around
                    # reads, reproducing the zero padding of Conv2d(padding=1).
                    shifted = pltpu.roll(v, (-off) % n_pix, 1) * mask_ref[t]
                parts.append(shifted.astype(compute_dtype))
        return jnp.concatenate(parts, axis=0)      # (9*C, n_pix)

    # ---- conv1 (3x3, pad=1): single fused MXU matmul, K = 9*c_in ----
    hid = jnp.dot(w1_ref[...], conv3x3_patches(x),
                  preferred_element_type=jnp.float32)       # (c_hid, n_pix) f32
    hid = jnp.maximum(hid + b1_ref[...], 0.0)               # bias + ReLU in f32

    # ---- conv2 (3x3, pad=1): single fused MXU matmul, K = 9*c_hid ----
    out = jnp.dot(w2_ref[...], conv3x3_patches(hid),
                  preferred_element_type=jnp.float32)       # (2, n_pix) f32
    o_ref[0] = out + b2_ref[...]


def flow_head_pallas(x_nchw, w1, b1, w2, b2, compute_dtype=jnp.bfloat16):
    """x_nchw: (B, C_in, H, W); w1: (C_hid, C_in, 3, 3); w2: (2, C_hid, 3, 3)."""
    B, c_in, H, W = x_nchw.shape
    c_hid = w1.shape[0]
    n_pix = H * W

    # NCHW flattens directly into channel-major / spatial-on-lanes layout.
    x_flat = x_nchw.reshape(B, c_in, n_pix).astype(jnp.float32)

    # OIHW -> (O, 9*I) with column index = (dy*3+dx)*I + i  (tap-major, matching
    # the row order produced by conv3x3_patches).
    w1f = jnp.transpose(w1, (0, 2, 3, 1)).reshape(c_hid, 9 * c_in).astype(compute_dtype)
    w2f = jnp.transpose(w2, (0, 2, 3, 1)).reshape(2, 9 * c_hid).astype(compute_dtype)
    b1f = b1.reshape(c_hid, 1).astype(jnp.float32)
    b2f = b2.reshape(2, 1).astype(jnp.float32)

    # 0/1 validity masks for the 9 taps of a 3x3, padding=1 convolution,
    # precomputed once in the wrapper (pure layout plumbing).
    q = jnp.arange(n_pix, dtype=jnp.int32)
    hh, ww = q // W, q % W
    mask_rows = []
    for dy in range(3):
        for dx in range(3):
            oy, ox = dy - 1, dx - 1
            valid = ((hh + oy >= 0) & (hh + oy < H) &
                     (ww + ox >= 0) & (ww + ox < W))
            mask_rows.append(valid)
    mask = jnp.stack(mask_rows, axis=0).astype(jnp.float32).reshape(9, 1, n_pix)

    kernel = functools.partial(_flow_head_kernel, W=W, n_pix=n_pix,
                               compute_dtype=compute_dtype)

    out_flat = pl.pallas_call(
        kernel,
        out_shape=jax.ShapeDtypeStruct((B, 2, n_pix), jnp.float32),
        grid_spec=pltpu.PrefetchScalarGridSpec(
            num_scalar_prefetch=0,
            grid=(B,),                      # one batch element per grid step
            in_specs=[
                pl.BlockSpec((1, c_in, n_pix), lambda b: (b, 0, 0)),
                pl.BlockSpec((c_hid, 9 * c_in), lambda b: (0, 0)),
                pl.BlockSpec((c_hid, 1), lambda b: (0, 0)),
                pl.BlockSpec((2, 9 * c_hid), lambda b: (0, 0)),
                pl.BlockSpec((2, 1), lambda b: (0, 0)),
                pl.BlockSpec((9, 1, n_pix), lambda b: (0, 0, 0)),
            ],
            out_specs=pl.BlockSpec((1, 2, n_pix), lambda b: (b, 0, 0)),
        ),
        compiler_params=pltpu.CompilerParams(dimension_semantics=("parallel",)),
    )(x_flat, w1f, b1f, w2f, b2f, mask)

    # Pure reshape (no transpose): (B, 2, H*W) -> (B, 2, H, W) NCHW.
    return out_flat.reshape(B, 2, H, W)


def flow_head_reference(x, w1, b1, w2, b2):
    """Pure-JAX f32 NCHW reference (matches PyTorch semantics)."""
    dn = jax.lax.conv_dimension_numbers(x.shape, w1.shape, ("NCHW", "OIHW", "NCHW"))
    h = jax.lax.conv_general_dilated(x, w1, (1, 1), ((1, 1), (1, 1)),
                                     dimension_numbers=dn)
    h = jnp.maximum(h + b1[None, :, None, None], 0.0)
    dn2 = jax.lax.conv_dimension_numbers(h.shape, w2.shape, ("NCHW", "OIHW", "NCHW"))
    o = jax.lax.conv_general_dilated(h, w2, (1, 1), ((1, 1), (1, 1)),
                                     dimension_numbers=dn2)
    return o + b2[None, :, None, None]


if __name__ == "__main__":
    # Small shapes consistent with FlowHead(input_dim, hidden_dim).
    B, C_IN, H, W = 2, 16, 16, 16
    C_HID = 32

    key = jax.random.PRNGKey(0)
    kx, k1, k2, k3, k4 = jax.random.split(key, 5)

    x = jax.random.normal(kx, (B, C_IN, H, W), dtype=jnp.float32)
    # Deterministic kaiming-style init (fan_in scaling), synthetic weights.
    w1 = jax.random.normal(k1, (C_HID, C_IN, 3, 3), dtype=jnp.float32) * (2.0 / (C_IN * 9)) ** 0.5
    b1 = jax.random.normal(k2, (C_HID,), dtype=jnp.float32) * 0.01
    w2 = jax.random.normal(k3, (2, C_HID, 3, 3), dtype=jnp.float32) * (2.0 / (C_HID * 9)) ** 0.5
    b2 = jax.random.normal(k4, (2,), dtype=jnp.float32) * 0.01

    ref = jax.block_until_ready(flow_head_reference(x, w1, b1, w2, b2))

    # Exact-semantics check: f32 MXU path vs f32 reference (tight).
    out_f32 = jax.block_until_ready(
        jax.jit(functools.partial(flow_head_pallas, compute_dtype=jnp.float32))(
            x, w1, b1, w2, b2))
    assert out_f32.shape == (B, 2, H, W), out_f32.shape
    err_f32 = float(jnp.max(jnp.abs(out_f32 - ref)))
    assert err_f32 < 1e-4, f"f32 path max err {err_f32}"

    # Fast path (default): bf16 MXU operands, f32 accumulation (perf review).
    out_bf16 = jax.block_until_ready(
        jax.jit(functools.partial(flow_head_pallas, compute_dtype=jnp.bfloat16))(
            x, w1, b1, w2, b2))
    assert out_bf16.shape == (B, 2, H, W), out_bf16.shape
    err_bf16 = float(jnp.max(jnp.abs(out_bf16 - ref)))
    assert err_bf16 < 1e-1, f"bf16 path max err {err_bf16}"

    print("KERNEL_OK")
</pallas_src>

<mosaic_0001>
module attributes {stable_mosaic.version = 11 : i64} {
  func.func @_flow_head_kernel(%arg0: i32, %arg1: memref<1x16x256xf32, #tpu.memory_space<vmem>>, %arg2: memref<32x144xf32, #tpu.memory_space<vmem>>, %arg3: memref<32x1xf32, #tpu.memory_space<vmem>>, %arg4: memref<2x288xf32, #tpu.memory_space<vmem>>, %arg5: memref<2x1xf32, #tpu.memory_space<vmem>>, %arg6: memref<9x1x256xf32, #tpu.memory_space<vmem>>, %arg7: memref<1x2x256xf32, #tpu.memory_space<vmem>>) attributes {dimension_semantics = [#tpu.dimension_semantics<parallel>], iteration_bounds = array<i64: 2>, scalar_prefetch = 0 : i64, scratch_operands = 0 : i64, tpu.core_type = #tpu.core_type<tc>, window_params = [{transform_indices = @transform_0, window_bounds = array<i64: 1, 16, 256>}, {pipeline_mode = #tpu.pipeline_mode<synchronous>, transform_indices = @transform_1, window_bounds = array<i64: 32, 144>}, {pipeline_mode = #tpu.pipeline_mode<synchronous>, transform_indices = @transform_2, window_bounds = array<i64: 32, 1>}, {pipeline_mode = #tpu.pipeline_mode<synchronous>, transform_indices = @transform_3, window_bounds = array<i64: 2, 288>}, {pipeline_mode = #tpu.pipeline_mode<synchronous>, transform_indices = @transform_4, window_bounds = array<i64: 2, 1>}, {pipeline_mode = #tpu.pipeline_mode<synchronous>, transform_indices = @transform_5, window_bounds = array<i64: 9, 1, 256>}, {transform_indices = @transform_6, window_bounds = array<i64: 1, 2, 256>}]} {
    %c0 = arith.constant 0 : index
    %c0_0 = arith.constant 0 : index
    %c0_1 = arith.constant 0 : index
    %0 = vector.load %arg1[%c0, %c0_0, %c0_1] : memref<1x16x256xf32, #tpu.memory_space<vmem>>, vector<1x16x256xf32>
    %1 = vector.shape_cast %0 : vector<1x16x256xf32> to vector<16x256xf32>
    %c0_2 = arith.constant 0 : index
    %c0_3 = arith.constant 0 : index
    %2 = vector.load %arg2[%c0_2, %c0_3] : memref<32x144xf32, #tpu.memory_space<vmem>>, vector<32x144xf32>
    %c17_i32 = arith.constant 17 : i32
    %3 = tpu.dynamic_rotate %1 by %c17_i32 dim 1 : vector<16x256xf32>, i32 -> vector<16x256xf32>
    %c0_4 = arith.constant 0 : index
    %c0_5 = arith.constant 0 : index
    %c0_6 = arith.constant 0 : index
    %4 = vector.load %arg6[%c0_4, %c0_5, %c0_6] : memref<9x1x256xf32, #tpu.memory_space<vmem>>, vector<1x1x256xf32>
    %5 = vector.shape_cast %4 : vector<1x1x256xf32> to vector<1x256xf32>
    %6 = vector.broadcast %5 : vector<1x256xf32> to vector<16x256xf32>
    %7 = arith.mulf %3, %6 : vector<16x256xf32>
    %c16_i32 = arith.constant 16 : i32
    %8 = tpu.dynamic_rotate %1 by %c16_i32 dim 1 : vector<16x256xf32>, i32 -> vector<16x256xf32>
    %c1 = arith.constant 1 : index
    %c0_7 = arith.constant 0 : index
    %c0_8 = arith.constant 0 : index
    %9 = vector.load %arg6[%c1, %c0_7, %c0_8] : memref<9x1x256xf32, #tpu.memory_space<vmem>>, vector<1x1x256xf32>
    %10 = vector.shape_cast %9 : vector<1x1x256xf32> to vector<1x256xf32>
    %11 = vector.broadcast %10 : vector<1x256xf32> to vector<16x256xf32>
    %12 = arith.mulf %8, %11 : vector<16x256xf32>
    %c15_i32 = arith.constant 15 : i32
    %13 = tpu.dynamic_rotate %1 by %c15_i32 dim 1 : vector<16x256xf32>, i32 -> vector<16x256xf32>
    %c2 = arith.constant 2 : index
    %c0_9 = arith.constant 0 : index
    %c0_10 = arith.constant 0 : index
    %14 = vector.load %arg6[%c2, %c0_9, %c0_10] : memref<9x1x256xf32, #tpu.memory_space<vmem>>, vector<1x1x256xf32>
    %15 = vector.shape_cast %14 : vector<1x1x256xf32> to vector<1x256xf32>
    %16 = vector.broadcast %15 : vector<1x256xf32> to vector<16x256xf32>
    %17 = arith.mulf %13, %16 : vector<16x256xf32>
    %c1_i32 = arith.constant 1 : i32
    %18 = tpu.dynamic_rotate %1 by %c1_i32 dim 1 : vector<16x256xf32>, i32 -> vector<16x256xf32>
    %c3 = arith.constant 3 : index
    %c0_11 = arith.constant 0 : index
    %c0_12 = arith.constant 0 : index
    %19 = vector.load %arg6[%c3, %c0_11, %c0_12] : memref<9x1x256xf32, #tpu.memory_space<vmem>>, vector<1x1x256xf32>
    %20 = vector.shape_cast %19 : vector<1x1x256xf32> to vector<1x256xf32>
    %21 = vector.broadcast %20 : vector<1x256xf32> to vector<16x256xf32>
    %22 = arith.mulf %18, %21 : vector<16x256xf32>
    %c255_i32 = arith.constant 255 : i32
    %23 = tpu.dynamic_rotate %1 by %c255_i32 dim 1 : vector<16x256xf32>, i32 -> vector<16x256xf32>
    %c5 = arith.constant 5 : index
    %c0_13 = arith.constant 0 : index
    %c0_14 = arith.constant 0 : index
    %24 = vector.load %arg6[%c5, %c0_13, %c0_14] : memref<9x1x256xf32, #tpu.memory_space<vmem>>, vector<1x1x256xf32>
    %25 = vector.shape_cast %24 : vector<1x1x256xf32> to vector<1x256xf32>
    %26 = vector.broadcast %25 : vector<1x256xf32> to vector<16x256xf32>
    %27 = arith.mulf %23, %26 : vector<16x256xf32>
    %c241_i32 = arith.constant 241 : i32
    %28 = tpu.dynamic_rotate %1 by %c241_i32 dim 1 : vector<16x256xf32>, i32 -> vector<16x256xf32>
    %c6 = arith.constant 6 : index
    %c0_15 = arith.constant 0 : index
    %c0_16 = arith.constant 0 : index
    %29 = vector.load %arg6[%c6, %c0_15, %c0_16] : memref<9x1x256xf32, #tpu.memory_space<vmem>>, vector<1x1x256xf32>
    %30 = vector.shape_cast %29 : vector<1x1x256xf32> to vector<1x256xf32>
    %31 = vector.broadcast %30 : vector<1x256xf32> to vector<16x256xf32>
    %32 = arith.mulf %28, %31 : vector<16x256xf32>
    %c240_i32 = arith.constant 240 : i32
    %33 = tpu.dynamic_rotate %1 by %c240_i32 dim 1 : vector<16x256xf32>, i32 -> vector<16x256xf32>
    %c7 = arith.constant 7 : index
    %c0_17 = arith.constant 0 : index
    %c0_18 = arith.constant 0 : index
    %34 = vector.load %arg6[%c7, %c0_17, %c0_18] : memref<9x1x256xf32, #tpu.memory_space<vmem>>, vector<1x1x256xf32>
    %35 = vector.shape_cast %34 : vector<1x1x256xf32> to vector<1x256xf32>
    %36 = vector.broadcast %35 : vector<1x256xf32> to vector<16x256xf32>
    %37 = arith.mulf %33, %36 : vector<16x256xf32>
    %c239_i32 = arith.constant 239 : i32
    %38 = tpu.dynamic_rotate %1 by %c239_i32 dim 1 : vector<16x256xf32>, i32 -> vector<16x256xf32>
    %c8 = arith.constant 8 : index
    %c0_19 = arith.constant 0 : index
    %c0_20 = arith.constant 0 : index
    %39 = vector.load %arg6[%c8, %c0_19, %c0_20] : memref<9x1x256xf32, #tpu.memory_space<vmem>>, vector<1x1x256xf32>
    %40 = vector.shape_cast %39 : vector<1x1x256xf32> to vector<1x256xf32>
    %41 = vector.broadcast %40 : vector<1x256xf32> to vector<16x256xf32>
    %42 = arith.mulf %38, %41 : vector<16x256xf32>
    %43 = tpu.concatenate %7, %12, %17, %22, %1, %27, %32, %37, %42 in 0 : vector<16x256xf32>, vector<16x256xf32>, vector<16x256xf32>, vector<16x256xf32>, vector<16x256xf32>, vector<16x256xf32>, vector<16x256xf32>, vector<16x256xf32>, vector<16x256xf32> -> vector<144x256xf32>
    %cst = arith.constant dense<0.000000e+00> : vector<32x256xf32>
    %44 = tpu.matmul %2, %43, %cst {dimension_numbers = #tpu.dot_dimension_numbers<[1], [0], [0], [1], [0, 0, 1, 1], [], []>} : vector<32x144xf32>, vector<144x256xf32>, vector<32x256xf32> -> vector<32x256xf32>
    %c0_21 = arith.constant 0 : index
    %c0_22 = arith.constant 0 : index
    %45 = vector.load %arg3[%c0_21, %c0_22] : memref<32x1xf32, #tpu.memory_space<vmem>>, vector<32x1xf32>
    %46 = vector.broadcast %45 : vector<32x1xf32> to vector<32x256xf32>
    %47 = arith.addf %44, %46 : vector<32x256xf32>
    %cst_23 = arith.constant 0.000000e+00 : f32
    %48 = vector.broadcast %cst_23 : f32 to vector<32x256xf32>
    %49 = arith.maximumf %47, %48 : vector<32x256xf32>
    %c0_24 = arith.constant 0 : index
    %c0_25 = arith.constant 0 : index
    %50 = vector.load %arg4[%c0_24, %c0_25] : memref<2x288xf32, #tpu.memory_space<vmem>>, vector<2x288xf32>
    %c17_i32_26 = arith.constant 17 : i32
    %51 = tpu.dynamic_rotate %49 by %c17_i32_26 dim 1 : vector<32x256xf32>, i32 -> vector<32x256xf32>
    %c0_27 = arith.constant 0 : index
    %c0_28 = arith.constant 0 : index
    %c0_29 = arith.constant 0 : index
    %52 = vector.load %arg6[%c0_27, %c0_28, %c0_29] : memref<9x1x256xf32, #tpu.memory_space<vmem>>, vector<1x1x256xf32>
    %53 = vector.shape_cast %52 : vector<1x1x256xf32> to vector<1x256xf32>
    %54 = vector.broadcast %53 : vector<1x256xf32> to vector<32x256xf32>
    %55 = arith.mulf %51, %54 : vector<32x256xf32>
    %c16_i32_30 = arith.constant 16 : i32
    %56 = tpu.dynamic_rotate %49 by %c16_i32_30 dim 1 : vector<32x256xf32>, i32 -> vector<32x256xf32>
    %c1_31 = arith.constant 1 : index
    %c0_32 = arith.constant 0 : index
    %c0_33 = arith.constant 0 : index
    %57 = vector.load %arg6[%c1_31, %c0_32, %c0_33] : memref<9x1x256xf32, #tpu.memory_space<vmem>>, vector<1x1x256xf32>
    %58 = vector.shape_cast %57 : vector<1x1x256xf32> to vector<1x256xf32>
    %59 = vector.broadcast %58 : vector<1x256xf32> to vector<32x256xf32>
    %60 = arith.mulf %56, %59 : vector<32x256xf32>
    %c15_i32_34 = arith.constant 15 : i32
    %61 = tpu.dynamic_rotate %49 by %c15_i32_34 dim 1 : vector<32x256xf32>, i32 -> vector<32x256xf32>
    %c2_35 = arith.constant 2 : index
    %c0_36 = arith.constant 0 : index
    %c0_37 = arith.constant 0 : index
    %62 = vector.load %arg6[%c2_35, %c0_36, %c0_37] : memref<9x1x256xf32, #tpu.memory_space<vmem>>, vector<1x1x256xf32>
    %63 = vector.shape_cast %62 : vector<1x1x256xf32> to vector<1x256xf32>
    %64 = vector.broadcast %63 : vector<1x256xf32> to vector<32x256xf32>
    %65 = arith.mulf %61, %64 : vector<32x256xf32>
    %c1_i32_38 = arith.constant 1 : i32
    %66 = tpu.dynamic_rotate %49 by %c1_i32_38 dim 1 : vector<32x256xf32>, i32 -> vector<32x256xf32>
    %c3_39 = arith.constant 3 : index
    %c0_40 = arith.constant 0 : index
    %c0_41 = arith.constant 0 : index
    %67 = vector.load %arg6[%c3_39, %c0_40, %c0_41] : memref<9x1x256xf32, #tpu.memory_space<vmem>>, vector<1x1x256xf32>
    %68 = vector.shape_cast %67 : vector<1x1x256xf32> to vector<1x256xf32>
    %69 = vector.broadcast %68 : vector<1x256xf32> to vector<32x256xf32>
    %70 = arith.mulf %66, %69 : vector<32x256xf32>
    %c255_i32_42 = arith.constant 255 : i32
    %71 = tpu.dynamic_rotate %49 by %c255_i32_42 dim 1 : vector<32x256xf32>, i32 -> vector<32x256xf32>
    %c5_43 = arith.constant 5 : index
    %c0_44 = arith.constant 0 : index
    %c0_45 = arith.constant 0 : index
    %72 = vector.load %arg6[%c5_43, %c0_44, %c0_45] : memref<9x1x256xf32, #tpu.memory_space<vmem>>, vector<1x1x256xf32>
    %73 = vector.shape_cast %72 : vector<1x1x256xf32> to vector<1x256xf32>
    %74 = vector.broadcast %73 : vector<1x256xf32> to vector<32x256xf32>
    %75 = arith.mulf %71, %74 : vector<32x256xf32>
    %c241_i32_46 = arith.constant 241 : i32
    %76 = tpu.dynamic_rotate %49 by %c241_i32_46 dim 1 : vector<32x256xf32>, i32 -> vector<32x256xf32>
    %c6_47 = arith.constant 6 : index
    %c0_48 = arith.constant 0 : index
    %c0_49 = arith.constant 0 : index
    %77 = vector.load %arg6[%c6_47, %c0_48, %c0_49] : memref<9x1x256xf32, #tpu.memory_space<vmem>>, vector<1x1x256xf32>
    %78 = vector.shape_cast %77 : vector<1x1x256xf32> to vector<1x256xf32>
    %79 = vector.broadcast %78 : vector<1x256xf32> to vector<32x256xf32>
    %80 = arith.mulf %76, %79 : vector<32x256xf32>
    %c240_i32_50 = arith.constant 240 : i32
    %81 = tpu.dynamic_rotate %49 by %c240_i32_50 dim 1 : vector<32x256xf32>, i32 -> vector<32x256xf32>
    %c7_51 = arith.constant 7 : index
    %c0_52 = arith.constant 0 : index
    %c0_53 = arith.constant 0 : index
    %82 = vector.load %arg6[%c7_51, %c0_52, %c0_53] : memref<9x1x256xf32, #tpu.memory_space<vmem>>, vector<1x1x256xf32>
    %83 = vector.shape_cast %82 : vector<1x1x256xf32> to vector<1x256xf32>
    %84 = vector.broadcast %83 : vector<1x256xf32> to vector<32x256xf32>
    %85 = arith.mulf %81, %84 : vector<32x256xf32>
    %c239_i32_54 = arith.constant 239 : i32
    %86 = tpu.dynamic_rotate %49 by %c239_i32_54 dim 1 : vector<32x256xf32>, i32 -> vector<32x256xf32>
    %c8_55 = arith.constant 8 : index
    %c0_56 = arith.constant 0 : index
    %c0_57 = arith.constant 0 : index
    %87 = vector.load %arg6[%c8_55, %c0_56, %c0_57] : memref<9x1x256xf32, #tpu.memory_space<vmem>>, vector<1x1x256xf32>
    %88 = vector.shape_cast %87 : vector<1x1x256xf32> to vector<1x256xf32>
    %89 = vector.broadcast %88 : vector<1x256xf32> to vector<32x256xf32>
    %90 = arith.mulf %86, %89 : vector<32x256xf32>
    %91 = tpu.concatenate %55, %60, %65, %70, %49, %75, %80, %85, %90 in 0 : vector<32x256xf32>, vector<32x256xf32>, vector<32x256xf32>, vector<32x256xf32>, vector<32x256xf32>, vector<32x256xf32>, vector<32x256xf32>, vector<32x256xf32>, vector<32x256xf32> -> vector<288x256xf32>
    %cst_58 = arith.constant dense<0.000000e+00> : vector<2x256xf32>
    %92 = tpu.matmul %50, %91, %cst_58 {dimension_numbers = #tpu.dot_dimension_numbers<[1], [0], [0], [1], [0, 0, 1, 1], [], []>} : vector<2x288xf32>, vector<288x256xf32>, vector<2x256xf32> -> vector<2x256xf32>
    %c0_59 = arith.constant 0 : index
    %c0_60 = arith.constant 0 : index
    %93 = vector.load %arg5[%c0_59, %c0_60] : memref<2x1xf32, #tpu.memory_space<vmem>>, vector<2x1xf32>
    %94 = vector.broadcast %93 : vector<2x1xf32> to vector<2x256xf32>
    %95 = arith.addf %92, %94 : vector<2x256xf32>
    %c0_61 = arith.constant 0 : index
    %c0_62 = arith.constant 0 : index
    %c0_63 = arith.constant 0 : index
    %96 = vector.load %arg7[%c0_61, %c0_62, %c0_63] : memref<1x2x256xf32, #tpu.memory_space<vmem>>, vector<1x2x256xf32>
    %97 = vector.shape_cast %96 : vector<1x2x256xf32> to vector<2x256xf32>
    %98 = vector.shape_cast %95 : vector<2x256xf32> to vector<1x2x256xf32>
    tpu.vector_store %arg7[%c0_61, %c0_62, %c0_63], %98 {strides = array<i32>} : memref<1x2x256xf32, #tpu.memory_space<vmem>>, vector<1x2x256xf32>,
    return
  }
  func.func @transform_0(%arg0: i32) -> (i32, i32, i32) {
    %c0_i32 = arith.constant 0 : i32
    %c0_i32_0 = arith.constant 0 : i32
    %c0_i32_1 = arith.constant 0 : i32
    return %arg0, %c0_i32, %c0_i32_0 : i32, i32, i32
  }
  func.func @transform_1(%arg0: i32) -> (i32, i32) {
    %c0_i32 = arith.constant 0 : i32
    %c0_i32_0 = arith.constant 0 : i32
    %c0_i32_1 = arith.constant 0 : i32
    return %c0_i32, %c0_i32_0 : i32, i32
  }
  func.func @transform_2(%arg0: i32) -> (i32, i32) {
    %c0_i32 = arith.constant 0 : i32
    %c0_i32_0 = arith.constant 0 : i32
    %c0_i32_1 = arith.constant 0 : i32
    return %c0_i32, %c0_i32_0 : i32, i32
  }
  func.func @transform_3(%arg0: i32) -> (i32, i32) {
    %c0_i32 = arith.constant 0 : i32
    %c0_i32_0 = arith.constant 0 : i32
    %c0_i32_1 = arith.constant 0 : i32
    return %c0_i32, %c0_i32_0 : i32, i32
  }
  func.func @transform_4(%arg0: i32) -> (i32, i32) {
    %c0_i32 = arith.constant 0 : i32
    %c0_i32_0 = arith.constant 0 : i32
    %c0_i32_1 = arith.constant 0 : i32
    return %c0_i32, %c0_i32_0 : i32, i32
  }
  func.func @transform_5(%arg0: i32) -> (i32, i32, i32) {
    %c0_i32 = arith.constant 0 : i32
    %c0_i32_0 = arith.constant 0 : i32
    %c0_i32_1 = arith.constant 0 : i32
    %c0_i32_2 = arith.constant 0 : i32
    return %c0_i32, %c0_i32_0, %c0_i32_1 : i32, i32, i32
  }
  func.func @transform_6(%arg0: i32) -> (i32, i32, i32) {
    %c0_i32 = arith.constant 0 : i32
    %c0_i32_0 = arith.constant 0 : i32
    %c0_i32_1 = arith.constant 0 : i32
    return %arg0, %c0_i32, %c0_i32_0 : i32, i32, i32
  }
}

</mosaic_0001>

<bundles_post_ra>
// kernel: flow_head_pallas.1
= control target key start
LH: loop header
LB: loop body
LE: loop exit
PB: predicated region body
PF: predicated region fallthrough
CT: control target
= control target key end

     0   :  { %s1347_s21 = smov 0   ;;  %s2168_s0 = inlined_call_operand.vmem [shape: f32[2,16,256], index: 0, kind: input, shape index: {}]   ;;  %s2169_s1 = inlined_call_operand.vmem [shape: f32[32,144], index: 1, kind: input, shape index: {}]   ;;  %s2170_s2 = inlined_call_operand.vmem [shape: f32[32,1], index: 2, kind: input, shape index: {}]   ;;  %s2171_s3 = inlined_call_operand.vmem [shape: f32[2,288], index: 3, kind: input, shape index: {}]   ;;  %s2172_s4 = inlined_call_operand.vmem [shape: f32[2,1], index: 4, kind: input, shape index: {}]   ;;  %s2173_s5 = inlined_call_operand.vmem [shape: f32[9,1,256], index: 5, kind: input, shape index: {}]   ;;  %s2174_s6 = inlined_call_operand.vmem [shape: f32[2,2,256], index: 6, kind: output, shape index: {}]  }
   0x1 LB: > { %s1133_s22 = sadd.s32 4294967295, %s1299_s21   ;;  %p1137_p0 = scmp.ge.s32.totalorder %s1299_s21, 1  ;;  %s1299_s21 = sphi %s1347_s21, %s16_s21  }
   0x2   : > { %p212_p1 = scmp.lt.s32.totalorder %s1299_s21, 3 }
   0x4   : > { %p213_p2 = pnand %p1137_p0, %p212_p1 }
   0x6   : > { %216 = sbr.rel (%p213_p2) target bundleno = 889 (0x379), region = 44 }
   0xd   : > { %p242_p3 = scmp.lt.s32.totalorder %s1133_s22, 1  ;;  %s1301_s27 = smov 17   ;;  %v257_v6 = vld [vmem:[%s2169_s1 + $0x8] sm:$0xff]  ;;  %vm529_vm0 = vcmask 130048   ;;  %v505_v8 = vld [vmem:[%s2170_s2] sm:$0xff]  ;;  %v1309_v9 = vmov 0   ;;  %v272_v12 = vlaneseq }
   0xe   : > { %s1302_s28 = smov 16   ;;  %s1303_s29 = smov 15   ;;  %1149 = vmatprep.mubr.msk.f32.mxu0 %vm529_vm0, %v257_v6  ;;  %v506_v7 = vld [vmem:[%s2170_s2 + $0x8] sm:$0xff]  ;;  %1291 = vset.pattern.permute.xlu1 %v1309_v9  ;;  %v507_v10 = vld [vmem:[%s2170_s2 + $0x10] sm:$0xff]  ;;  %v508_v11 = vld [vmem:[%s2170_s2 + $0x18] sm:$0xff]  ;;  %vm921_vm9 = vcmask 261120  }
   0xf   : > { %s2196_s22 = smov (!%p242_p3, %s1133_s22), 1  ;;  %s1304_s30 = smov 1   ;;  %1290 = vset.pattern.permute.xlu0 %v1309_v9  ;;  %v1453_v13 = vshrl.u32 %v272_v12, 7  ;;  %v1455_v14 = vand.u32 127, %v272_v12  ;;  %v279_v17 = vld [vmem:[%s2173_s5] sm:$0x3] }
  0x10   : > { %s1157_s23 = sshll.u32 %s2196_s22, 5  ;;  %s1305_s7 = smov 127   ;;  %v1142_v32 = vld [vmem:[%s2173_s5 + $0x2] sm:$0x3]  ;;  %v1143_v49 = vld [vmem:[%s2173_s5 + $0x4] sm:$0x3] }
  0x11   : > { %s246_s26 = scalar_lea.vmem %s2168_s0, %s1157_s23  ;;  %s1306_s8 = smov 113   ;;  %v1458_v15 = vsub.s32 0, %v1453_v13  ;;  %v1461_v16 = vsub.s32 1, %v1453_v13  ;;  %vm274_vm1 = vcmp.lt.s32.totalorder %v1455_v14, 17  ;;  %vm303_vm2 = vcmp.lt.s32.totalorder %v1455_v14, 16 }
  0x12   : > { %v1361_v0 = vld [vmem:[%s246_s26 + $0x8] sm:$0xff]  ;;  %v1363_v1 = vld [vmem:[%s246_s26] sm:$0xff]  ;;  %v1369_v2 = vld [vmem:[%s246_s26 + $0x18] sm:$0xff]  ;;  %s1307_s9 = smov 112   ;;  %s1308_s12 = smov 111   ;;  %vm333_vm3 = vcmp.lt.s32.totalorder %v1455_v14, 15 }
  0x13   : > { %268 = vrot.lane.b32.xlu1 %v1361_v0, %s1301_s27  ;;  %264 = vrot.lane.b32.xlu0 %v1363_v1, %s1301_s27  ;;  %v1371_v3 = vld [vmem:[%s246_s26 + $0x10] sm:$0xff]  ;;  %v1175_v4 = vpack.c.bf16 %v1369_v2, %v1361_v0  ;;  %v1468_v20 = vrot.slane %v279_v17, %v1458_v15  ;;  %v1471_v21 = vrot.slane %v279_v17, %v1461_v16  ;;  %vm363_vm4 = vcmp.lt.s32.totalorder %v1455_v14, 1 }
  0x14   : > { %v1177_v5 = vpack.c.bf16 %v1371_v3, %v1363_v1  ;;  %v1490_v37 = vrot.slane %v1142_v32, %v1458_v15  ;;  %v1493_v38 = vrot.slane %v1142_v32, %v1461_v16  ;;  %v1512_v54 = vrot.slane %v1143_v49, %v1458_v15 }
  0x15   : > { %v1515_v55 = vrot.slane %v1143_v49, %v1461_v16  ;;  %vm393_vm5 = vcmp.lt.s32.totalorder %v1455_v14, 127  ;;  %vm423_vm6 = vcmp.lt.s32.totalorder %v1455_v14, 113  ;;  %vm453_vm7 = vcmp.lt.s32.totalorder %v1455_v14, 112 }
  0x16   : > { %vm483_vm8 = vcmp.lt.s32.totalorder %v1455_v14, 111 }
  0x17   : > { %270 = vrot.lane.b32.xlu1 %v1369_v2, %s1301_s27  ;;  %266 = vrot.lane.b32.xlu0 %v1371_v3, %s1301_s27 }
  0x1b   : > { %297 = vrot.lane.b32.xlu1 %v1371_v3, %s1302_s28  ;;  %295 = vrot.lane.b32.xlu0 %v1363_v1, %s1302_s28 }
  0x1f   : > { %301 = vrot.lane.b32.xlu1 %v1369_v2, %s1302_s28  ;;  %299 = vrot.lane.b32.xlu0 %v1361_v0, %s1302_s28 }
  0x23   : > { %327 = vrot.lane.b32.xlu1 %v1371_v3, %s1303_s29  ;;  %325 = vrot.lane.b32.xlu0 %v1363_v1, %s1303_s29 }
  0x27   : > { %331 = vrot.lane.b32.xlu1 %v1369_v2, %s1303_s29  ;;  %329 = vrot.lane.b32.xlu0 %v1361_v0, %s1303_s29 }
  0x2b   : > { %357 = vrot.lane.b32.xlu1 %v1371_v3, %s1304_s30  ;;  %355 = vrot.lane.b32.xlu0 %v1363_v1, %s1304_s30 }
  0x2f   : > { %361 = vrot.lane.b32.xlu1 %v1369_v2, %s1304_s30  ;;  %359 = vrot.lane.b32.xlu0 %v1361_v0, %s1304_s30 }
  0x33   : > { %387 = vrot.lane.b32.xlu1 %v1371_v3, %s1305_s7  ;;  %385 = vrot.lane.b32.xlu0 %v1363_v1, %s1305_s7 }
  0x37   : > { %391 = vrot.lane.b32.xlu1 %v1369_v2, %s1305_s7  ;;  %389 = vrot.lane.b32.xlu0 %v1361_v0, %s1305_s7 }
  0x3b   : > { %417 = vrot.lane.b32.xlu1 %v1371_v3, %s1306_s8  ;;  %415 = vrot.lane.b32.xlu0 %v1363_v1, %s1306_s8 }
  0x3f   : > { %421 = vrot.lane.b32.xlu1 %v1369_v2, %s1306_s8  ;;  %419 = vrot.lane.b32.xlu0 %v1361_v0, %s1306_s8 }
  0x43   : > { %447 = vrot.lane.b32.xlu1 %v1371_v3, %s1307_s9  ;;  %445 = vrot.lane.b32.xlu0 %v1363_v1, %s1307_s9 }
  0x47   : > { %451 = vrot.lane.b32.xlu1 %v1369_v2, %s1307_s9  ;;  %449 = vrot.lane.b32.xlu0 %v1361_v0, %s1307_s9 }
  0x4b   : > { %477 = vrot.lane.b32.xlu1 %v1371_v3, %s1308_s12  ;;  %475 = vrot.lane.b32.xlu0 %v1363_v1, %s1308_s12 }
  0x4f   : > { %481 = vrot.lane.b32.xlu1 %v1369_v2, %s1308_s12  ;;  %479 = vrot.lane.b32.xlu0 %v1361_v0, %s1308_s12  ;;  %v1146_v2 = vld [vmem:[%s2173_s5 + $0xc] sm:$0x3] }
  0x53   : > { %516 = vperm.xlu1 %1291, %v506_v7   ;;  %511 = vperm.xlu0 %1290, %v505_v8   ;;  %v1144_v8 = vld [vmem:[%s2173_s5 + $0x6] sm:$0x3] }
  0x54   : > { %v1534_v17 = vrot.slane %v1144_v8, %v1458_v15 }
  0x57   : > { %521 = vperm.xlu1 %1291, %v507_v10   ;;  %526 = vperm.xlu0 %1290, %v508_v11  }
  0x85   : > { %v269_v18 = vpop.permute.xlu1 %268  ;;  %v265_v19 = vpop.permute.xlu0 %264 }
  0x86   : > { %v277_v22 = vsel %vm274_vm1, %v269_v18, %v265_v19  ;;  %v275_v23 = vsel %vm274_vm1, %v265_v19, %v269_v18  ;;  %v1537_v18 = vrot.slane %v1144_v8, %v1461_v16 }
  0x87   : > { %v292_v29 = vmul.f32 %v1471_v21, %v275_v23  ;;  %v291_v31 = vmul.f32 %v1468_v20, %v277_v22 }
  0x89   : > { %v271_v24 = vpop.permute.xlu1 %270  ;;  %v267_v25 = vpop.permute.xlu0 %266 }
  0x8a   : > { %v276_v26 = vsel %vm274_vm1, %v267_v25, %v271_v24  ;;  %v278_v27 = vsel %vm274_vm1, %v271_v24, %v267_v25 }
  0x8b   : > { %v293_v28 = vmul.f32 %v1468_v20, %v278_v27  ;;  %v294_v30 = vmul.f32 %v1471_v21, %v276_v26 }
  0x8d   : > { %v298_v33 = vpop.permute.xlu1 %297  ;;  %v296_v34 = vpop.permute.xlu0 %295  ;;  %v1159_v35 = vpack.c.bf16 %v294_v30, %v292_v29  ;;  %v1161_v36 = vpack.c.bf16 %v293_v28, %v291_v31  ;;  %v1145_v31 = vld [vmem:[%s2173_s5 + $0xa] sm:$0x3] }
  0x8f   : > { %1160 = vmatprep.subr.bf16.mxu0 %v1159_v35 }
  0x90   : > { %1162 = vmatpush1.bf16.msra.mxu0 %v1161_v36  ;;  %v1556_v36 = vrot.slane %v1145_v31, %v1458_v15 }
  0x91   : > { %v302_v39 = vpop.permute.xlu1 %301  ;;  %v300_v40 = vpop.permute.xlu0 %299 }
  0x92   : > { %v305_v41 = vsel %vm303_vm2, %v298_v33, %v302_v39  ;;  %v307_v42 = vsel %vm303_vm2, %v302_v39, %v298_v33  ;;  %v304_v43 = vsel %vm303_vm2, %v296_v34, %v300_v40  ;;  %v306_v44 = vsel %vm303_vm2, %v300_v40, %v296_v34 }
  0x93   : > { %v323_v45 = vmul.f32 %v1490_v37, %v307_v42  ;;  %v324_v46 = vmul.f32 %v1493_v38, %v305_v41  ;;  %v321_v47 = vmul.f32 %v1490_v37, %v306_v44  ;;  %v322_v48 = vmul.f32 %v1493_v38, %v304_v43 }
  0x94   : > { %v1559_v39 = vrot.slane %v1145_v31, %v1461_v16 }
  0x95   : > { %v328_v50 = vpop.permute.xlu1 %327  ;;  %v326_v51 = vpop.permute.xlu0 %325  ;;  %v1163_v52 = vpack.c.bf16 %v324_v46, %v322_v48  ;;  %v1165_v53 = vpack.c.bf16 %v323_v45, %v321_v47 }
  0x97   : > { %1164 = vmatprep.subr.bf16.mxu0 %v1163_v52  ;;  %v1584_v52 = vrot.slane %v1146_v2, %v1458_v15 }
  0x98   : > { %1166 = vmatpush1.bf16.msra.mxu0 %v1165_v53  ;;  %v1587_v53 = vrot.slane %v1146_v2, %v1461_v16 }
  0x99   : > { %v332_v56 = vpop.permute.xlu1 %331  ;;  %v330_v57 = vpop.permute.xlu0 %329 }
  0x9a   : > { %v335_v58 = vsel %vm333_vm3, %v328_v50, %v332_v56  ;;  %v337_v59 = vsel %vm333_vm3, %v332_v56, %v328_v50  ;;  %v334_v60 = vsel %vm333_vm3, %v326_v51, %v330_v57  ;;  %v336_v61 = vsel %vm333_vm3, %v330_v57, %v326_v51 }
  0x9b   : > { %v353_v62 = vmul.f32 %v1512_v54, %v337_v59  ;;  %v354_v63 = vmul.f32 %v1515_v55, %v335_v58  ;;  %v351_v6 = vmul.f32 %v1512_v54, %v336_v61  ;;  %v352_v7 = vmul.f32 %v1515_v55, %v334_v60 }
  0x9d   : > { %v358_v9 = vpop.permute.xlu1 %357  ;;  %v356_v10 = vpop.permute.xlu0 %355  ;;  %v1167_v11 = vpack.c.bf16 %v354_v63, %v352_v7  ;;  %v1169_v12 = vpack.c.bf16 %v353_v62, %v351_v6  ;;  %v1147_v63 = vld [vmem:[%s2173_s5 + $0xe] sm:$0x3] }
  0x9f   : > { %1168 = vmatprep.subr.bf16.mxu0 %v1167_v11  ;;  %v1609_v11 = vrot.slane %v1147_v63, %v1461_v16 }
  0xa0   : > { %1170 = vmatpush1.bf16.msra.mxu0 %v1169_v12 }
  0xa1   : > { %v362_v19 = vpop.permute.xlu1 %361  ;;  %v360_v22 = vpop.permute.xlu0 %359  ;;  %2181 = vst [vmem:[#allocation3_spill] sm:$0xff] %v1609_v11 }
  0xa2   : > { %v365_v23 = vsel %vm363_vm4, %v358_v9, %v362_v19  ;;  %v367_v24 = vsel %vm363_vm4, %v362_v19, %v358_v9  ;;  %v364_v25 = vsel %vm363_vm4, %v356_v10, %v360_v22  ;;  %v366_v26 = vsel %vm363_vm4, %v360_v22, %v356_v10 }
  0xa3   : > { %v383_v27 = vmul.f32 %v1534_v17, %v367_v24  ;;  %v384_v28 = vmul.f32 %v1537_v18, %v365_v23  ;;  %v381_v29 = vmul.f32 %v1534_v17, %v366_v26  ;;  %v382_v30 = vmul.f32 %v1537_v18, %v364_v25 }
  0xa4   : > { %v1606_v10 = vrot.slane %v1147_v63, %v1458_v15 }
  0xa5   : > { %v388_v32 = vpop.permute.xlu1 %387  ;;  %v386_v33 = vpop.permute.xlu0 %385  ;;  %v1171_v34 = vpack.c.bf16 %v384_v28, %v382_v30  ;;  %v1173_v35 = vpack.c.bf16 %v383_v27, %v381_v29  ;;  %v1148_v30 = vld [vmem:[%s2173_s5 + $0x10] sm:$0x3] }
  0xa6   : > { %2180 = vst [vmem:[#allocation2_spill] sm:$0xff] %v1606_v10 }
  0xa7   : > { %1172 = vmatprep.subr.bf16.mxu0 %v1171_v34 }
  0xa8   : > { %1174 = vmatpush1.bf16.msra.mxu0 %v1173_v35  ;;  %v1628_v35 = vrot.slane %v1148_v30, %v1458_v15 }
  0xa9   : > { %v392_v40 = vpop.permute.xlu1 %391  ;;  %v390_v41 = vpop.permute.xlu0 %389  ;;  %1176 = vmatprep.subr.bf16.mxu0 %v1175_v4 }
  0xaa   : > { %v395_v42 = vsel %vm393_vm5, %v388_v32, %v392_v40  ;;  %v397_v43 = vsel %vm393_vm5, %v392_v40, %v388_v32  ;;  %v394_v44 = vsel %vm393_vm5, %v386_v33, %v390_v41  ;;  %v396_v45 = vsel %vm393_vm5, %v390_v41, %v386_v33 }
  0xab   : > { %v413_v46 = vmul.f32 %v1556_v36, %v395_v42  ;;  %v414_v47 = vmul.f32 %v1559_v39, %v397_v43  ;;  %v411_v48 = vmul.f32 %v1556_v36, %v394_v44  ;;  %v412_v0 = vmul.f32 %v1559_v39, %v396_v45 }
  0xac   : > { %1178 = vmatpush1.bf16.msra.mxu0 %v1177_v5  ;;  %v1631_v40 = vrot.slane %v1148_v30, %v1461_v16 }
  0xad   : > { %v418_v4 = vpop.permute.xlu1 %417  ;;  %v416_v49 = vpop.permute.xlu0 %415  ;;  %v1179_v50 = vpack.c.bf16 %v414_v47, %v412_v0  ;;  %v1181_v51 = vpack.c.bf16 %v413_v46, %v411_v48 }
  0xaf   : > { %1180 = vmatprep.subr.bf16.mxu0 %v1179_v50  ;;  %v258_v50 = vld [vmem:[%s2169_s1 + $0x10] sm:$0xff] }
  0xb0   : > { %1182 = vmatpush1.bf16.msra.mxu0 %v1181_v51  ;;  %v261_v51 = vld [vmem:[%s2169_s1 + $0x28] sm:$0xff] }
  0xb1   : > { %v422_v1 = vpop.permute.xlu1 %421  ;;  %v420_v3 = vpop.permute.xlu0 %419 }
  0xb2   : > { %v425_v5 = vsel %vm423_vm6, %v418_v4, %v422_v1  ;;  %v427_v56 = vsel %vm423_vm6, %v422_v1, %v418_v4  ;;  %v424_v57 = vsel %vm423_vm6, %v416_v49, %v420_v3  ;;  %v426_v58 = vsel %vm423_vm6, %v420_v3, %v416_v49  ;;  %v256_v4 = vld [vmem:[%s2169_s1] sm:$0xff]  ;;  %v259_v49 = vld [vmem:[%s2169_s1 + $0x18] sm:$0xff] }
  0xb3   : > { %v443_v59 = vmul.f32 %v1584_v52, %v425_v5  ;;  %v444_v60 = vmul.f32 %v1587_v53, %v427_v56  ;;  %v441_v61 = vmul.f32 %v1584_v52, %v424_v57  ;;  %v442_v62 = vmul.f32 %v1587_v53, %v426_v58  ;;  %v260_v1 = vld [vmem:[%s2169_s1 + $0x20] sm:$0xff]  ;;  %v263_v3 = vld [vmem:[%s2169_s1 + $0x38] sm:$0xff]  ;;  %v262_v5 = vld [vmem:[%s2169_s1 + $0x30] sm:$0xff] }
  0xb5   : > { %v448_v6 = vpop.permute.xlu1 %447  ;;  %v446_v7 = vpop.permute.xlu0 %445  ;;  %v1183_v8 = vpack.c.bf16 %v444_v60, %v442_v62  ;;  %v1185_v9 = vpack.c.bf16 %v443_v59, %v441_v61 }
  0xb7   : > { %1184 = vmatprep.subr.bf16.mxu0 %v1183_v8 }
  0xb8   : > { %1186 = vmatpush1.bf16.msra.mxu0 %v1185_v9 }
  0xb9   : > { %v452_v12 = vpop.permute.xlu1 %451  ;;  %v450_v19 = vpop.permute.xlu0 %449 }
  0xba   : > { %v455_v22 = vsel %vm453_vm7, %v448_v6, %v452_v12  ;;  %v457_v23 = vsel %vm453_vm7, %v452_v12, %v448_v6  ;;  %v454_v24 = vsel %vm453_vm7, %v446_v7, %v450_v19  ;;  %v456_v25 = vsel %vm453_vm7, %v450_v19, %v446_v7 }
  0xbb   : > { %v473_v26 = vmul.f32 %v1606_v10, %v455_v22  ;;  %v474_v27 = vmul.f32 %v1609_v11, %v457_v23  ;;  %v471_v28 = vmul.f32 %v1606_v10, %v454_v24  ;;  %v472_v29 = vmul.f32 %v1609_v11, %v456_v25 }
  0xbd   : > { %v478_v31 = vpop.permute.xlu1 %477  ;;  %v476_v32 = vpop.permute.xlu0 %475  ;;  %v1187_v33 = vpack.c.bf16 %v474_v27, %v472_v29  ;;  %v1189_v34 = vpack.c.bf16 %v473_v26, %v471_v28 }
  0xbf   : > { %1188 = vmatprep.subr.bf16.mxu0 %v1187_v33 }
  0xc0   : > { %1190 = vmatpush1.bf16.msra.mxu0 %v1189_v34 }
  0xc1   : > { %v482_v41 = vpop.permute.xlu1 %481  ;;  %v480_v42 = vpop.permute.xlu0 %479 }
  0xc2   : > { %v485_v43 = vsel %vm483_vm8, %v478_v31, %v482_v41  ;;  %v487_v44 = vsel %vm483_vm8, %v482_v41, %v478_v31  ;;  %v484_v45 = vsel %vm483_vm8, %v476_v32, %v480_v42  ;;  %v486_v46 = vsel %vm483_vm8, %v480_v42, %v476_v32 }
  0xc3   : > { %v503_v15 = vmul.f32 %v1628_v35, %v485_v43  ;;  %v504_v16 = vmul.f32 %v1631_v40, %v487_v44  ;;  %v501_v47 = vmul.f32 %v1628_v35, %v484_v45  ;;  %v502_v48 = vmul.f32 %v1631_v40, %v486_v46 }
  0xc4   : > { %v1310_v42 = vmov 1983009808  }
  0xc5   : > { %v1191_v0 = vpack.c.bf16 %v504_v16, %v502_v48  ;;  %v1193_v2 = vpack.c.bf16 %v503_v15, %v501_v47  ;;  %v905_v43 = vunpack.c.l.s4 %v1310_v42  ;;  %v639_v15 = vld [vmem:[%s2171_s3] sm:$0x3f] }
  0xc7   : > { %1192 = vmatprep.subr.bf16.mxu0 %v1191_v0  ;;  %v906_v44 = vunpack.c.0.s8 %v905_v43 }
  0xc8   : > { %1194 = vmatpush1.bf16.msra.mxu0 %v1193_v2 }
  0xc9   : > { %v909_v45 = vsub.s32 %v906_v44, %v1453_v13  ;;  %v903_v13 = vcombine.high %v639_v15, %v639_v15 }
  0xcb   : > { %607 = vmatmul.mubr.f32.vlgmr.msra.gmra.mrb[0].mxu0 %v256_v4  ;;  %v1803_v16 = vrot.slane %v639_v15, %v909_v45  ;;  %v1817_v2 = vrot.slane %v903_v13, %v909_v45 }
  0xcc   : > { %1150 = vmatprep.mubr.msk.f32.mxu0 %vm529_vm0, %v259_v49 }
  0xcd   : > { %2182 = vst [vmem:[#allocation4_spill] sm:$0xff] %v1803_v16  ;;  %v918_v47 = vcombine.high %v1803_v16, %v1803_v16  ;;  %2183 = vst [vmem:[#allocation5_spill] sm:$0xff] %v1817_v2 }
  0xcf   : > { %613 = vmatmul.mubr.f32.gmra.mrb[2].mxu0 %v258_v50  ;;  %988 = vmatprep.mubr.f32.mxu1 %v918_v47  ;;  %v1311_v50 = vmov 0.0  }
  0xd0   : > { %1151 = vmatprep.mubr.msk.f32.mxu0 %vm529_vm0, %v261_v51  ;;  %v896_v51 = vld [vmem:[%s2172_s4] sm:$0x3] }
  0xd2   : > { %v512_v56 = vpop.permute.xlu0 %511  ;;  %v517_v61 = vpop.permute.xlu1 %516 }
  0xd3   : > { %619 = vmatmul.mubr.f32.gmra.mrb[4].mxu0 %v260_v1 }
  0xd4   : > { %1152 = vmatprep.mubr.msk.f32.mxu0 %vm529_vm0, %v263_v3  ;;  %v2194_v14 = vld [vmem:[#allocation5_spill] sm:$0xff] }
  0xd6   : > { %v522_v26 = vpop.permute.xlu1 %521  ;;  %v527_v28 = vpop.permute.xlu0 %526 }
  0xd7   : > { %625 = vmatmul.mubr.f32.gmra.mrb[6].mxu0 %v262_v5 }
  0xd8   : > { %1059 = vmatprep.mubr.f32.mxu0 %v1311_v50 }
 0x19e   : > { %v608_v57 = vpop.f32.mrb[0].mxu0 }
 0x19f   : > { %v609_v58 = vadd.f32 %v608_v57, %v512_v56  ;;  %v610_v59 = vpop.f32.mrb[1].mxu0 }
 0x1a0   : > { %v611_v22 = vadd.f32 %v610_v59, %v512_v56 }
 0x1a1   : > { %v1669_v60 = vmax.f32 %v609_v58, 0.0 }
 0x1a2   : > { %v614_v62 = vpop.f32.mrb[2].mxu0  ;;  %v1695_v23 = vmax.f32 %v611_v22, 0.0 }
 0x1a3   : > { %v615_v63 = vadd.f32 %v614_v62, %v517_v61  ;;  %v616_v6 = vpop.f32.mrb[3].mxu0  ;;  %640 = vrot.lane.b32.xlu1 %v1669_v60, %s1301_s27 }
 0x1a4   : > { %v617_v24 = vadd.f32 %v616_v6, %v517_v61 }
 0x1a5   : > { %v1673_v7 = vmax.f32 %v615_v63, 0.0 }
 0x1a6   : > { %v620_v8 = vpop.f32.mrb[4].mxu0  ;;  %v1701_v25 = vmax.f32 %v617_v24, 0.0 }
 0x1a7   : > { %v622_v9 = vpop.f32.mrb[5].mxu0  ;;  %642 = vrot.lane.b32.xlu0 %v1673_v7, %s1301_s27  ;;  %672 = vrot.lane.b32.xlu1 %v1669_v60, %s1302_s28  ;;  %v621_v27 = vadd.f32 %v620_v8, %v522_v26 }
 0x1a8   : > { %v623_v32 = vadd.f32 %v622_v9, %v522_v26 }
 0x1a9   : > { %v1719_v29 = vmax.f32 %v621_v27, 0.0 }
 0x1aa   : > { %v626_v12 = vpop.f32.mrb[6].mxu0  ;;  %v1743_v33 = vmax.f32 %v623_v32, 0.0 }
 0x1ab   : > { %v628_v19 = vpop.f32.mrb[7].mxu0  ;;  %674 = vrot.lane.b32.xlu0 %v1673_v7, %s1302_s28  ;;  %704 = vrot.lane.b32.xlu1 %v1669_v60, %s1303_s29  ;;  %v627_v30 = vadd.f32 %v626_v12, %v527_v28 }
 0x1ac   : > { %v629_v34 = vadd.f32 %v628_v19, %v527_v28 }
 0x1ad   : > { %v1725_v31 = vmax.f32 %v627_v30, 0.0 }
 0x1ae   : > { %v1749_v41 = vmax.f32 %v629_v34, 0.0 }
 0x1af   : > { %706 = vrot.lane.b32.xlu0 %v1673_v7, %s1303_s29  ;;  %736 = vrot.lane.b32.xlu1 %v1669_v60, %s1304_s30 }
 0x1b3   : > { %738 = vrot.lane.b32.xlu0 %v1673_v7, %s1304_s30  ;;  %768 = vrot.lane.b32.xlu1 %v1669_v60, %s1305_s7 }
 0x1b7   : > { %770 = vrot.lane.b32.xlu0 %v1673_v7, %s1305_s7  ;;  %800 = vrot.lane.b32.xlu1 %v1669_v60, %s1306_s8 }
 0x1bb   : > { %802 = vrot.lane.b32.xlu0 %v1673_v7, %s1306_s8  ;;  %648 = vrot.lane.b32.xlu1 %v1695_v23, %s1301_s27 }
 0x1bf   : > { %650 = vrot.lane.b32.xlu0 %v1701_v25, %s1301_s27  ;;  %680 = vrot.lane.b32.xlu1 %v1695_v23, %s1302_s28 }
 0x1c3   : > { %682 = vrot.lane.b32.xlu0 %v1701_v25, %s1302_s28  ;;  %712 = vrot.lane.b32.xlu1 %v1695_v23, %s1303_s29 }
 0x1c7   : > { %714 = vrot.lane.b32.xlu0 %v1701_v25, %s1303_s29  ;;  %744 = vrot.lane.b32.xlu1 %v1695_v23, %s1304_s30 }
 0x1cb   : > { %746 = vrot.lane.b32.xlu0 %v1701_v25, %s1304_s30  ;;  %776 = vrot.lane.b32.xlu1 %v1695_v23, %s1305_s7 }
 0x1cf   : > { %778 = vrot.lane.b32.xlu0 %v1701_v25, %s1305_s7  ;;  %644 = vrot.lane.b32.xlu1 %v1719_v29, %s1301_s27 }
 0x1d3   : > { %646 = vrot.lane.b32.xlu0 %v1725_v31, %s1301_s27  ;;  %676 = vrot.lane.b32.xlu1 %v1719_v29, %s1302_s28 }
 0x1d7   : > { %678 = vrot.lane.b32.xlu0 %v1725_v31, %s1302_s28  ;;  %708 = vrot.lane.b32.xlu1 %v1719_v29, %s1303_s29 }
 0x1db   : > { %710 = vrot.lane.b32.xlu0 %v1725_v31, %s1303_s29  ;;  %740 = vrot.lane.b32.xlu1 %v1719_v29, %s1304_s30 }
 0x1df   : > { %742 = vrot.lane.b32.xlu0 %v1725_v31, %s1304_s30  ;;  %772 = vrot.lane.b32.xlu1 %v1719_v29, %s1305_s7 }
 0x1e3   : > { %774 = vrot.lane.b32.xlu0 %v1725_v31, %s1305_s7  ;;  %652 = vrot.lane.b32.xlu1 %v1743_v33, %s1301_s27 }
 0x1e7   : > { %654 = vrot.lane.b32.xlu0 %v1749_v41, %s1301_s27  ;;  %808 = vrot.lane.b32.xlu1 %v1695_v23, %s1306_s8 }
 0x1eb   : > { %810 = vrot.lane.b32.xlu0 %v1701_v25, %s1306_s8  ;;  %684 = vrot.lane.b32.xlu1 %v1743_v33, %s1302_s28 }
 0x1ef   : > { %686 = vrot.lane.b32.xlu0 %v1749_v41, %s1302_s28  ;;  %716 = vrot.lane.b32.xlu1 %v1743_v33, %s1303_s29 }
 0x1f3   : > { %806 = vrot.lane.b32.xlu0 %v1725_v31, %s1306_s8  ;;  %748 = vrot.lane.b32.xlu1 %v1743_v33, %s1304_s30 }
 0x1f7   : > { %718 = vrot.lane.b32.xlu0 %v1749_v41, %s1303_s29  ;;  %780 = vrot.lane.b32.xlu1 %v1743_v33, %s1305_s7 }
 0x1fb   : > { %834 = vrot.lane.b32.xlu0 %v1673_v7, %s1307_s9  ;;  %804 = vrot.lane.b32.xlu1 %v1719_v29, %s1306_s8 }
 0x1ff   : > { %750 = vrot.lane.b32.xlu0 %v1749_v41, %s1304_s30  ;;  %812 = vrot.lane.b32.xlu1 %v1743_v33, %s1306_s8 }
 0x203   : > { %842 = vrot.lane.b32.xlu0 %v1701_v25, %s1307_s9  ;;  %832 = vrot.lane.b32.xlu1 %v1669_v60, %s1307_s9 }
 0x207   : > { %866 = vrot.lane.b32.xlu0 %v1673_v7, %s1308_s12  ;;  %840 = vrot.lane.b32.xlu1 %v1695_v23, %s1307_s9 }
 0x20b   : > { %874 = vrot.lane.b32.xlu0 %v1701_v25, %s1308_s12  ;;  %864 = vrot.lane.b32.xlu1 %v1669_v60, %s1308_s12 }
 0x20f   : > { %782 = vrot.lane.b32.xlu0 %v1749_v41, %s1305_s7  ;;  %872 = vrot.lane.b32.xlu1 %v1695_v23, %s1308_s12  ;;  %s1158_s7 = sshll.u32 %s2196_s22, 2 }
 0x213   : > { %838 = vrot.lane.b32.xlu0 %v1725_v31, %s1307_s9  ;;  %836 = vrot.lane.b32.xlu1 %v1719_v29, %s1307_s9 }
 0x215   : > { %v641_v46 = vpop.permute.xlu1 %640 }
 0x217   : > { %814 = vrot.lane.b32.xlu0 %v1749_v41, %s1306_s8  ;;  %844 = vrot.lane.b32.xlu1 %v1743_v33, %s1307_s9 }
 0x219   : > { %v643_v48 = vpop.permute.xlu0 %642  ;;  %v1811_v0 = vpop.permute.xlu1 %672 }
 0x21b   : > { %870 = vrot.lane.b32.xlu0 %v1725_v31, %s1308_s12  ;;  %868 = vrot.lane.b32.xlu1 %v1719_v29, %s1308_s12 }
 0x21d   : > { %v1819_v4 = vpop.permute.xlu0 %674  ;;  %v705_v49 = vpop.permute.xlu1 %704 }
 0x21f   : > { %846 = vrot.lane.b32.xlu0 %v1749_v41, %s1307_s9  ;;  %876 = vrot.lane.b32.xlu1 %v1743_v33, %s1308_s12 }
 0x221   : > { %v707_v1 = vpop.permute.xlu0 %706  ;;  %v737_v3 = vpop.permute.xlu1 %736 }
 0x223   : > { %878 = vrot.lane.b32.xlu0 %v1749_v41, %s1308_s12  ;;  %899 = vperm.xlu1 %1291, %v896_v51   ;;  %s251_s12 = scalar_lea.vmem %s2174_s6, %s1158_s7 }
 0x225   : > { %v739_v5 = vpop.permute.xlu0 %738  ;;  %v769_v56 = vpop.permute.xlu1 %768 }
 0x229   : > { %v771_v57 = vpop.permute.xlu0 %770  ;;  %v1830_v58 = vpop.permute.xlu1 %800 }
 0x22d   : > { %v1832_v59 = vpop.permute.xlu0 %802  ;;  %v649_v61 = vpop.permute.xlu1 %648 }
 0x22e   : > { %v656_v62 = vsel %vm274_vm1, %v641_v46, %v649_v61  ;;  %v660_v63 = vsel %vm274_vm1, %v649_v61, %v641_v46 }
 0x22f   : > { %v664_v19 = vmul.f32 %v660_v63, %v1468_v20  ;;  %v665_v24 = vmul.f32 %v656_v62, %v1471_v21 }
 0x231   : > { %v651_v6 = vpop.permute.xlu0 %650  ;;  %v1838_v8 = vpop.permute.xlu1 %680 }
 0x232   : > { %v657_v9 = vsel %vm274_vm1, %v643_v48, %v651_v6  ;;  %v661_v12 = vsel %vm274_vm1, %v651_v6, %v643_v48  ;;  %v692_v27 = vsel %vm303_vm2, %v1838_v8, %v1811_v0 }
 0x233   : > { %v666_v22 = vmul.f32 %v661_v12, %v1468_v20  ;;  %v667_v26 = vmul.f32 %v657_v9, %v1471_v21  ;;  %v1856_v43 = vmul.f32 %v692_v27, %v1490_v37 }
 0x235   : > { %v683_v28 = vpop.permute.xlu0 %682  ;;  %v713_v30 = vpop.permute.xlu1 %712  ;;  %v1195_v32 = vpack.c.bf16 %v667_v26, %v665_v24  ;;  %v1197_v34 = vpack.c.bf16 %v666_v22, %v664_v19  ;;  %v688_v19 = vsel %vm303_vm2, %v1811_v0, %v1838_v8 }
 0x236   : > { %v693_v42 = vsel %vm303_vm2, %v683_v28, %v1819_v4  ;;  %v720_v45 = vsel %vm333_vm3, %v705_v49, %v713_v30  ;;  %v724_v46 = vsel %vm333_vm3, %v713_v30, %v705_v49  ;;  %v697_v0 = vmul.f32 %v688_v19, %v1493_v38 }
 0x237   : > { %v1859_v44 = vmul.f32 %v693_v42, %v1490_v37  ;;  %1196 = vmatprep.subr.bf16.mxu1 %v1195_v32  ;;  %v1872_v51 = vmul.f32 %v724_v46, %v1512_v54  ;;  %v1875_v61 = vmul.f32 %v720_v45, %v1515_v55  ;;  %v689_v45 = vsel %vm303_vm2, %v1819_v4, %v683_v28 }
 0x238   : > { %1198 = vmatpush1.bf16.msra.mxu1 %v1197_v34  ;;  %v699_v2 = vmul.f32 %v689_v45, %v1493_v38 }
 0x239   : > { %v715_v15 = vpop.permute.xlu0 %714  ;;  %v745_v47 = vpop.permute.xlu1 %744 }
 0x23a   : > { %v721_v13 = vsel %vm333_vm3, %v707_v1, %v715_v15  ;;  %v725_v50 = vsel %vm333_vm3, %v715_v15, %v707_v1  ;;  %v752_v63 = vsel %vm363_vm4, %v737_v3, %v745_v47  ;;  %v756_v6 = vsel %vm363_vm4, %v745_v47, %v737_v3 }
 0x23b   : > { %v1878_v49 = vmul.f32 %v725_v50, %v1512_v54  ;;  %v1881_v62 = vmul.f32 %v721_v13, %v1515_v55  ;;  %v1898_v27 = vmul.f32 %v756_v6, %v1534_v17  ;;  %v1901_v3 = vmul.f32 %v752_v63, %v1537_v18 }
 0x23d   : > { %v747_v9 = vpop.permute.xlu0 %746  ;;  %v777_v1 = vpop.permute.xlu1 %776 }
 0x23e   : > { %v753_v22 = vsel %vm363_vm4, %v739_v5, %v747_v9  ;;  %v757_v24 = vsel %vm363_vm4, %v747_v9, %v739_v5  ;;  %v784_v26 = vsel %vm393_vm5, %v769_v56, %v777_v1  ;;  %v788_v34 = vsel %vm393_vm5, %v777_v1, %v769_v56 }
 0x23f   : > { %v1904_v30 = vmul.f32 %v757_v24, %v1534_v17  ;;  %v1907_v32 = vmul.f32 %v753_v22, %v1537_v18  ;;  %v1920_v13 = vmul.f32 %v784_v26, %v1556_v36  ;;  %v1923_v50 = vmul.f32 %v788_v34, %v1559_v39 }
 0x241   : > { %v779_v42 = vpop.permute.xlu0 %778  ;;  %v645_v5 = vpop.permute.xlu1 %644 }
 0x242   : > { %v785_v15 = vsel %vm393_vm5, %v771_v57, %v779_v42  ;;  %v789_v47 = vsel %vm393_vm5, %v779_v42, %v771_v57 }
 0x243   : > { %v1926_v56 = vmul.f32 %v785_v15, %v1556_v36  ;;  %v1929_v63 = vmul.f32 %v789_v47, %v1559_v39 }
 0x245   : > { %v647_v6 = vpop.permute.xlu0 %646  ;;  %v677_v9 = vpop.permute.xlu1 %676 }
 0x249   : > { %v679_v22 = vpop.permute.xlu0 %678  ;;  %v709_v24 = vpop.permute.xlu1 %708 }
 0x24d   : > { %v711_v26 = vpop.permute.xlu0 %710  ;;  %v1935_v42 = vpop.permute.xlu1 %740 }
 0x251   : > { %v1937_v34 = vpop.permute.xlu0 %742  ;;  %v1939_v15 = vpop.permute.xlu1 %772 }
 0x255   : > { %v1941_v46 = vpop.permute.xlu0 %774  ;;  %v653_v47 = vpop.permute.xlu1 %652 }
 0x256   : > { %v658_v1 = vsel %vm274_vm1, %v645_v5, %v653_v47  ;;  %v662_v57 = vsel %vm274_vm1, %v653_v47, %v645_v5 }
 0x257   : > { %v668_v28 = vmul.f32 %v662_v57, %v1468_v20  ;;  %v669_v10 = vmul.f32 %v658_v1, %v1471_v21 }
 0x259   : > { %v655_v12 = vpop.permute.xlu0 %654  ;;  %v809_v48 = vpop.permute.xlu1 %808 }
 0x25a   : > { %v659_v16 = vsel %vm274_vm1, %v647_v6, %v655_v12  ;;  %v663_v4 = vsel %vm274_vm1, %v655_v12, %v647_v6  ;;  %v816_v8 = vsel %vm423_vm6, %v1830_v58, %v809_v48  ;;  %v820_v45 = vsel %vm423_vm6, %v809_v48, %v1830_v58 }
 0x25b   : > { %v670_v5 = vmul.f32 %v663_v4, %v1468_v20  ;;  %v671_v47 = vmul.f32 %v659_v16, %v1471_v21  ;;  %v1203_v16 = vpack.c.bf16 %v699_v2, %v697_v0  ;;  %v1977_v19 = vmul.f32 %v816_v8, %v1584_v52 }
 0x25c   : > { %v1980_v1 = vmul.f32 %v820_v45, %v1587_v53 }
 0x25d   : > { %v811_v11 = vpop.permute.xlu0 %810  ;;  %v685_v12 = vpop.permute.xlu1 %684  ;;  %v1199_v6 = vpack.c.bf16 %v671_v47, %v669_v10  ;;  %v1201_v57 = vpack.c.bf16 %v670_v5, %v668_v28 }
 0x25e   : > { %v817_v20 = vsel %vm423_vm6, %v1832_v59, %v811_v11  ;;  %v821_v21 = vsel %vm423_vm6, %v811_v11, %v1832_v59  ;;  %v690_v48 = vsel %vm303_vm2, %v677_v9, %v685_v12  ;;  %v694_v11 = vsel %vm303_vm2, %v685_v12, %v677_v9 }
 0x25f   : > { %v1983_v58 = vmul.f32 %v817_v20, %v1584_v52  ;;  %v1986_v10 = vmul.f32 %v821_v21, %v1587_v53  ;;  %1200 = vmatprep.subr.bf16.mxu1 %v1199_v6  ;;  %v700_v0 = vmul.f32 %v694_v11, %v1490_v37  ;;  %v701_v9 = vmul.f32 %v690_v48, %v1493_v38 }
 0x260   : > { %1202 = vmatpush1.bf16.msra.mxu1 %v1201_v57  ;;  %v2184_v12 = vpack.c.bf16 %v1859_v44, %v1856_v43 }
 0x261   : > { %v687_v2 = vpop.permute.xlu0 %686  ;;  %1204 = vmatprep.subr.bf16.mxu1 %v1203_v16  ;;  %v717_v59 = vpop.permute.xlu1 %716  ;;  %v1243_v4 = vpack.c.bf16 %v1986_v10, %v1980_v1  ;;  %v1245_v28 = vpack.c.bf16 %v1983_v58, %v1977_v19  ;;  %v2191_v1 = vld [vmem:[#allocation3_spill] sm:$0xff] }
 0x262   : > { %v691_v5 = vsel %vm303_vm2, %v679_v22, %v687_v2  ;;  %v695_v47 = vsel %vm303_vm2, %v687_v2, %v679_v22  ;;  %v722_v22 = vsel %vm333_vm3, %v709_v24, %v717_v59  ;;  %v726_v16 = vsel %vm333_vm3, %v717_v59, %v709_v24 }
 0x263   : > { %v702_v8 = vmul.f32 %v695_v47, %v1490_v37  ;;  %v703_v45 = vmul.f32 %v691_v5, %v1493_v38  ;;  %v2185_v38 = vpack.c.bf16 %v1881_v62, %v1875_v61  ;;  %v732_v11 = vmul.f32 %v726_v16, %v1512_v54 }
 0x264   : > { %1206 = vmatpush1.bf16.msra.mxu1 %v2184_v12  ;;  %v733_v2 = vmul.f32 %v722_v22, %v1515_v55  ;;  %v2186_v59 = vpack.c.bf16 %v1878_v49, %v1872_v51  ;;  %v2187_v51 = vpack.c.bf16 %v1907_v32, %v1901_v3  ;;  %v2188_v3 = vpack.c.bf16 %v1904_v30, %v1898_v27 }
 0x265   : > { %v2007_v6 = vpop.permute.xlu0 %806  ;;  %v749_v57 = vpop.permute.xlu1 %748  ;;  %v1207_v20 = vpack.c.bf16 %v703_v45, %v701_v9  ;;  %v1209_v21 = vpack.c.bf16 %v702_v8, %v700_v0 }
 0x267   : > { %1208 = vmatprep.subr.bf16.mxu1 %v1207_v20 }
 0x268   : > { %1210 = vmatpush1.bf16.msra.mxu1 %v1209_v21 }
 0x269   : > { %v719_v37 = vpop.permute.xlu0 %718  ;;  %1212 = vmatprep.subr.bf16.mxu1 %v2185_v38  ;;  %v781_v43 = vpop.permute.xlu1 %780  ;;  %v1233_v38 = vpack.c.bf16 %v1725_v31, %v1719_v29 }
 0x26a   : > { %v723_v44 = vsel %vm333_vm3, %v711_v26, %v719_v37  ;;  %v727_v48 = vsel %vm333_vm3, %v719_v37, %v711_v26  ;;  %v754_v26 = vsel %vm363_vm4, %v1935_v42, %v749_v57 }
 0x26b   : > { %v734_v5 = vmul.f32 %v727_v48, %v1512_v54  ;;  %v735_v24 = vmul.f32 %v723_v44, %v1515_v55  ;;  %v758_v54 = vsel %vm363_vm4, %v749_v57, %v1935_v42  ;;  %v765_v12 = vmul.f32 %v754_v26, %v1537_v18 }
 0x26c   : > { %1214 = vmatpush1.bf16.msra.mxu1 %v2186_v59  ;;  %v764_v45 = vmul.f32 %v758_v54, %v1534_v17 }
 0x26d   : > { %v2027_v61 = vpop.permute.xlu0 %834  ;;  %v2029_v62 = vpop.permute.xlu1 %804  ;;  %v1215_v47 = vpack.c.bf16 %v735_v24, %v733_v2  ;;  %v1217_v0 = vpack.c.bf16 %v734_v5, %v732_v11 }
 0x26f   : > { %1216 = vmatprep.subr.bf16.mxu1 %v1215_v47  ;;  %v2190_v47 = vpack.c.bf16 %v1926_v56, %v1920_v13 }
 0x270   : > { %1218 = vmatpush1.bf16.msra.mxu1 %v1217_v0 }
 0x271   : > { %v751_v55 = vpop.permute.xlu0 %750  ;;  %1220 = vmatprep.subr.bf16.mxu1 %v2187_v51  ;;  %v813_v49 = vpop.permute.xlu1 %812 }
 0x272   : > { %v755_v9 = vsel %vm363_vm4, %v1937_v34, %v751_v55  ;;  %v759_v8 = vsel %vm363_vm4, %v751_v55, %v1937_v34  ;;  %v1227_v34 = vpack.c.bf16 %v1701_v25, %v1695_v23  ;;  %v786_v23 = vsel %vm393_vm5, %v1939_v15, %v781_v43 }
 0x273   : > { %v766_v42 = vmul.f32 %v759_v8, %v1534_v17  ;;  %v767_v57 = vmul.f32 %v755_v9, %v1537_v18  ;;  %v1229_v17 = vpack.c.bf16 %v1673_v7, %v1669_v60  ;;  %v1231_v18 = vpack.c.bf16 %v1749_v41, %v1743_v33 }
 0x274   : > { %1222 = vmatpush1.bf16.msra.mxu1 %v2188_v3  ;;  %v790_v25 = vsel %vm393_vm5, %v781_v43, %v1939_v15  ;;  %v796_v33 = vmul.f32 %v786_v23, %v1556_v36  ;;  %v2189_v15 = vpack.c.bf16 %v1929_v63, %v1923_v50 }
 0x275   : > { %v2053_v32 = vpop.permute.xlu0 %842  ;;  %v833_v20 = vpop.permute.xlu1 %832  ;;  %v1223_v21 = vpack.c.bf16 %v767_v57, %v765_v12  ;;  %v1225_v22 = vpack.c.bf16 %v766_v42, %v764_v45  ;;  %v797_v41 = vmul.f32 %v790_v25, %v1559_v39 }
 0x276   : > { %v849_v3 = vsel %vm453_vm7, %v2027_v61, %v2053_v32 }
 0x277   : > { %1224 = vmatprep.subr.bf16.mxu1 %v1223_v21 }
 0x278   : > { %1226 = vmatpush1.bf16.msra.mxu1 %v1225_v22 }
 0x279   : > { %v867_v16 = vpop.permute.xlu0 %866  ;;  %1228 = vmatprep.subr.bf16.mxu1 %v1227_v34  ;;  %v841_v37 = vpop.permute.xlu1 %840 }
 0x27a   : > { %v852_v13 = vsel %vm453_vm7, %v841_v37, %v833_v20  ;;  %v848_v42 = vsel %vm453_vm7, %v833_v20, %v841_v37 }
 0x27b   : > { %v857_v10 = vmul.f32 %v852_v13, %v2191_v1 }
 0x27c   : > { %1230 = vmatpush1.bf16.msra.mxu1 %v1229_v17 }
 0x27d   : > { %v875_v27 = vpop.permute.xlu0 %874  ;;  %v865_v30 = vpop.permute.xlu1 %864  ;;  %1232 = vmatprep.subr.bf16.mxu1 %v1231_v18 }
 0x27e   : > { %v881_v60 = vsel %vm483_vm8, %v867_v16, %v875_v27  ;;  %v885_v7 = vsel %vm483_vm8, %v875_v27, %v867_v16  ;;  %v2192_v16 = vld [vmem:[#allocation2_spill] sm:$0xff] }
 0x27f   : > { %v890_v29 = vmul.f32 %v881_v60, %v1628_v35  ;;  %v891_v31 = vmul.f32 %v885_v7, %v1631_v40  ;;  %v856_v37 = vmul.f32 %v848_v42, %v2192_v16 }
 0x280   : > { %1234 = vmatpush1.bf16.msra.mxu1 %v1233_v38 }
 0x281   : > { %v783_v44 = vpop.permute.xlu0 %782  ;;  %v873_v48 = vpop.permute.xlu1 %872  ;;  %1236 = vmatprep.subr.bf16.mxu1 %v2189_v15 }
 0x282   : > { %v787_v43 = vsel %vm393_vm5, %v1941_v46, %v783_v44  ;;  %v791_v11 = vsel %vm393_vm5, %v783_v44, %v1941_v46  ;;  %v880_v2 = vsel %vm483_vm8, %v865_v30, %v873_v48  ;;  %v884_v5 = vsel %vm483_vm8, %v873_v48, %v865_v30 }
 0x283   : > { %v798_v24 = vmul.f32 %v787_v43, %v1556_v36  ;;  %v799_v59 = vmul.f32 %v791_v11, %v1559_v39  ;;  %v888_v50 = vmul.f32 %v880_v2, %v1628_v35  ;;  %v889_v63 = vmul.f32 %v884_v5, %v1631_v40  ;;  %v2193_v5 = vld [vmem:[#allocation4_spill] sm:$0xff] }
 0x284   : > { %1238 = vmatpush1.bf16.msra.mxu1 %v2190_v47  ;;  %v818_v36 = vsel %vm423_vm6, %v2029_v62, %v813_v49  ;;  %v822_v39 = vsel %vm423_vm6, %v813_v49, %v2029_v62  ;;  %v853_v62 = vsel %vm453_vm7, %v2053_v32, %v2027_v61 }
 0x285   : > { %v1261_v0 = vpack.c.bf16 %v890_v29, %v888_v50  ;;  %v839_v46 = vpop.permute.xlu0 %838  ;;  %v837_v26 = vpop.permute.xlu1 %836  ;;  %v1239_v54 = vpack.c.bf16 %v799_v59, %v797_v41  ;;  %v1259_v55 = vpack.c.bf16 %v891_v31, %v889_v63  ;;  %v1241_v51 = vpack.c.bf16 %v798_v24, %v796_v33 }
 0x286   : > { %v828_v56 = vmul.f32 %v818_v36, %v1584_v52  ;;  %v829_v45 = vmul.f32 %v822_v39, %v1587_v53 }
 0x287   : > { %1240 = vmatprep.subr.bf16.mxu1 %v1239_v54  ;;  %1260 = vmatprep.subr.bf16.mxu0 %v1259_v55 }
 0x288   : > { %1242 = vmatpush1.bf16.msra.mxu1 %v1241_v51  ;;  %1262 = vmatpush1.bf16.msra.mxu0 %v1261_v0 }
 0x289   : > { %v815_v9 = vpop.permute.xlu0 %814  ;;  %v845_v8 = vpop.permute.xlu1 %844  ;;  %1244 = vmatprep.subr.bf16.mxu1 %v1243_v4 }
 0x28a   : > { %v819_v49 = vsel %vm423_vm6, %v2007_v6, %v815_v9  ;;  %v823_v12 = vsel %vm423_vm6, %v815_v9, %v2007_v6  ;;  %v859_v6 = vmul.f32 %v853_v62, %v2191_v1  ;;  %v850_v19 = vsel %vm453_vm7, %v837_v26, %v845_v8 }
 0x28b   : > { %v830_v4 = vmul.f32 %v819_v49, %v1584_v52  ;;  %v831_v57 = vmul.f32 %v823_v12, %v1587_v53  ;;  %v858_v53 = vmul.f32 %v849_v3, %v2192_v16  ;;  %v854_v58 = vsel %vm453_vm7, %v845_v8, %v837_v26 }
 0x28c   : > { %1246 = vmatpush1.bf16.msra.mxu1 %v1245_v28  ;;  %v1251_v52 = vpack.c.bf16 %v859_v6, %v857_v10  ;;  %v860_v27 = vmul.f32 %v850_v19, %v2192_v16  ;;  %v861_v30 = vmul.f32 %v854_v58, %v2191_v1 }
 0x28d   : > { %v871_v21 = vpop.permute.xlu0 %870  ;;  %v869_v22 = vpop.permute.xlu1 %868  ;;  %v1247_v20 = vpack.c.bf16 %v831_v57, %v829_v45  ;;  %v1249_v34 = vpack.c.bf16 %v830_v4, %v828_v56  ;;  %v1253_v18 = vpack.c.bf16 %v858_v53, %v856_v37 }
 0x28f   : > { %1248 = vmatprep.subr.bf16.mxu1 %v1247_v20 }
 0x290   : > { %1250 = vmatpush1.bf16.msra.mxu1 %v1249_v34 }
 0x291   : > { %v847_v28 = vpop.permute.xlu0 %846  ;;  %v877_v61 = vpop.permute.xlu1 %876  ;;  %1252 = vmatprep.subr.bf16.mxu1 %v1251_v52 }
 0x292   : > { %v851_v32 = vsel %vm453_vm7, %v839_v46, %v847_v28  ;;  %v855_v17 = vsel %vm453_vm7, %v847_v28, %v839_v46  ;;  %v882_v25 = vsel %vm483_vm8, %v869_v22, %v877_v61  ;;  %v886_v60 = vsel %vm483_vm8, %v877_v61, %v869_v22 }
 0x293   : > { %v862_v38 = vmul.f32 %v851_v32, %v2192_v16  ;;  %v863_v23 = vmul.f32 %v855_v17, %v2191_v1  ;;  %v892_v44 = vmul.f32 %v882_v25, %v1628_v35  ;;  %v893_v48 = vmul.f32 %v886_v60, %v1631_v40 }
 0x294   : > { %1254 = vmatpush1.bf16.msra.mxu1 %v1253_v18 }
 0x295   : > { %v879_v7 = vpop.permute.xlu0 %878  ;;  %v1255_v33 = vpack.c.bf16 %v863_v23, %v861_v30  ;;  %v1257_v41 = vpack.c.bf16 %v862_v38, %v860_v27 }
 0x296   : > { %v883_v29 = vsel %vm483_vm8, %v871_v21, %v879_v7  ;;  %v887_v31 = vsel %vm483_vm8, %v879_v7, %v871_v21 }
 0x297   : > { %v894_v15 = vmul.f32 %v883_v29, %v1628_v35  ;;  %v895_v43 = vmul.f32 %v887_v31, %v1631_v40  ;;  %1256 = vmatprep.subr.bf16.mxu1 %v1255_v33 }
 0x298   : > { %1258 = vmatpush1.bf16.msra.mxu1 %v1257_v41 }
 0x299   : > { %v1265_v11 = vpack.c.bf16 %v894_v15, %v892_v44  ;;  %v1263_v2 = vpack.c.bf16 %v895_v43, %v893_v48 }
 0x29b   : > { %989 = vmatmul.mubr.f32.vlgmr.msra.gmra.mrb[0].mxu1 %v2193_v5  ;;  %1264 = vmatprep.subr.bf16.mxu0 %v1263_v2 }
 0x29c   : > { %1266 = vmatpush1.bf16.msra.mxu0 %v1265_v11 }
 0x29f   : > { %1153 = vmatmul.mubr.msk.f32.vlgmr.msra.gmra.mrb[8].mxu0 %vm921_vm9, %v2194_v14 }
 0x2a2   : > { %v900_v50 = vpop.permute.xlu1 %899 }
 0x36e   : > { %v990_v24 = vpop.f32.mrb[0].mxu1 }
 0x36f   : > { %v992_v59 = vpop.f32.mrb[1].mxu1  ;;  %v991_v63 = vadd.f32 %v990_v24, %v900_v50 }
 0x370   : > { %v993_v47 = vadd.f32 %v992_v59, %v900_v50 }
 0x372   : > { %v1061_v35 = vpop.f32.mrb[8].mxu0 }
 0x373   : > { %v1062_v40 = vadd.f32 %v1061_v35, %v991_v63  ;;  %v1063_v0 = vpop.f32.mrb[9].mxu0 }
 0x374   : > { %v1064_v46 = vadd.f32 %v1063_v0, %v993_v47 }
 0x376   : > { %v1068_v26 = vcombine.low %v1062_v40, %v1064_v46 }
 0x378   : > { %1154 = vst.sshfl [vmem:[%s251_s12] sm:$0x33 pattern:$0x76325410] %v1068_v26 }
 0x379 PF: > { %s16_s21 = sadd.s32 1, %s1299_s21  }
 0x37a   : > { %p13_p4 = scmp.ge.s32.totalorder %s16_s21, 4  }
 0x37c   :  { %15 = sbr.rel (!%p13_p4) target bundleno = 1 (0x1), region = 81 }

</bundles_post_ra>
